<compile_context>
chip_gen: v7x
topology: tpu7x:2x2x1
jax: 0.10.0
libtpu: 0.0.40
codegen_flags: <defaults>
</compile_context>

<pallas_src>
from functools import partial

import jax
import jax.numpy as jnp
from jax import lax
from jax.experimental import pallas as pl
from jax.experimental.pallas import tpu as pltpu

EPS = 1e-5  # nn.LayerNorm default eps


def noise_predictor_kernel(x_ref, wih_ref, whh_ref, b_ref, gamma_ref, beta_ref,
                           w1_ref, b1_ref, w2_ref, b2_ref, w3_ref, b3_ref, out_ref):
    # x_ref / out_ref: (Bb, T, 3) f32 per-batch-tile blocks.
    # wih_ref: (3, 4H) f32; whh_ref: (H, 4H) bf16 (gate order i|f|g|o); b_ref: (1, 4H) f32.
    Bb, T, D = x_ref.shape
    H = whh_ref.shape[0]
    Hq = H // 4

    x = x_ref[...]                                            # (Bb, T, 3) f32

    # ---- Hoisted input projection: K=3 -> pure VPU broadcast-FMAs in f32 (MXU would be
    #      <3% utilized), combined bias folded in.  Per-step slices are hoisted below so
    #      the serial loop only carries the h@W_hh chain.
    wih = wih_ref[...]                                        # (3, 4H) f32
    xw = (x[:, :, 0:1] * wih[0:1, :]
          + x[:, :, 1:2] * wih[1:2, :]
          + x[:, :, 2:3] * wih[2:3, :]
          + b_ref[...])                                       # (Bb, T, 4H) f32
    xw_t = [xw[:, t, :] for t in range(T)]                    # T x (Bb, 4H), off critical path

    whh = whh_ref[...]                                        # (H, 4H) bf16, lane-dense RHS
    # TODO(synk): on v5e, check the bundle dump that this RHS is hoisted (weight-stationary)
    # across the unrolled steps; if not, drive the MXU with pltpu.matmul_push_rhs/_acc_lhs/_pop.

    # ---- Recurrence: fully unrolled (T static & small); one fused (Bb,H)@(H,4H) MXU
    #      matmul per step, full-vreg EUP nonlinearities, hidden states stay vreg-resident.
    h = jnp.zeros((Bb, H), jnp.float32)
    c = jnp.zeros((Bb, H), jnp.float32)
    hs = []
    for t in range(T):
        pre = xw_t[t] + jnp.dot(h.astype(jnp.bfloat16), whh,
                                preferred_element_type=jnp.float32)      # (Bb, 4H) f32
        sig = jax.nn.sigmoid(pre)                             # full 128-lane vreg (EUP)
        tnh = jnp.tanh(pre)                                   # full 128-lane vreg (EUP)
        i_g = sig[:, 0 * H:1 * H]
        f_g = sig[:, 1 * H:2 * H]
        g_g = tnh[:, 2 * H:3 * H]
        o_g = sig[:, 3 * H:4 * H]
        c = f_g * c + i_g * g_g
        h = o_g * jnp.tanh(c)
        hs.append(h)                                          # no VMEM spill

    # Batch-major (Bb*T, H) slab (rows ordered (b, t)) for the one-shot LN + MLP head.
    hseq = jnp.concatenate([hh.reshape(Bb, 1, H) for hh in hs],
                           axis=1).reshape(Bb * T, H)

    mu = jnp.mean(hseq, axis=-1, keepdims=True)
    var = jnp.mean((hseq - mu) ** 2, axis=-1, keepdims=True)
    ln = (hseq - mu) * lax.rsqrt(var + EPS) * gamma_ref[...] + beta_ref[...]

    # Dropout(0.3) is identity in eval mode.
    r1 = jnp.maximum(jnp.dot(ln.astype(jnp.bfloat16), w1_ref[...],
                             preferred_element_type=jnp.float32) + b1_ref[...], 0.0)
    r2 = jnp.maximum(jnp.dot(r1.astype(jnp.bfloat16), w2_ref[...],
                             preferred_element_type=jnp.float32) + b2_ref[...], 0.0)
    # TODO(synk): the PyTorch source does `x_refined += residual` with shapes
    # (B,T,H//4) += (B,T,H), which is not broadcastable and would error at runtime;
    # we add the first H//4 residual channels instead (same choice as before).
    xr = r2 + ln[:, :Hq]
    pred = (jnp.dot(xr.astype(jnp.bfloat16), w3_ref[...],
                    preferred_element_type=jnp.float32) + b3_ref[...])    # (Bb*T, 3)

    # Single output store, including `predicted_noise += noisy_trajectory`.
    # TODO(synk): for production B*T, emit a lane-dense (3, B*T) output slab instead of
    # masked stores into a last-dim-3 layout.
    out_ref[...] = pred.reshape(Bb, T, D) + x


def _prep_kernel_args(params):
    """Keep W_ih in f32 (VPU FMA operand), W_hh fused & lane-dense in bf16, fc weights bf16."""
    H = params["whh"].shape[0]
    wih = params["wih"]                                               # (3, 4H) f32
    whh = params["whh"].astype(jnp.bfloat16)                          # (H, 4H) bf16
    b = (params["bih"] + params["bhh"]).reshape(1, 4 * H)             # (1, 4H) f32
    gamma = params["gamma"].reshape(1, H)
    beta = params["beta"].reshape(1, H)
    w1 = params["w1"].astype(jnp.bfloat16); b1 = params["b1"].reshape(1, -1)
    w2 = params["w2"].astype(jnp.bfloat16); b2 = params["b2"].reshape(1, -1)
    w3 = params["w3"].astype(jnp.bfloat16); b3 = params["b3"].reshape(1, -1)
    return (wih, whh, b, gamma, beta, w1, b1, w2, b2, w3, b3)


@partial(jax.jit, static_argnames=("b_block",))
def noise_predictor_lstm(noisy_trajectory, params, b_block=1):
    """noisy_trajectory: (B, T, 3) f32. Returns predicted_noise: (B, T, 3) f32."""
    B, T, D = noisy_trajectory.shape
    if B % b_block != 0:
        raise ValueError("B must be divisible by b_block")
    args = _prep_kernel_args(params)

    vmem_full = pl.BlockSpec(memory_space=pltpu.MemorySpace.VMEM)   # whole array, untiled
    x_spec = pl.BlockSpec((b_block, T, D), lambda b: (b, 0, 0))

    # Batch grid axis ("parallel") -> both v7x TensorCores get B-tiles; on v5e/v6e it is
    # a cheap sequential loop.  It also bounds per-step VMEM by the B-tile, which is the
    # sizing that matters on v7x (64 MiB physical / 32 MiB scoped default).
    # TODO(synk): for production B*T, set vmem_limit_bytes explicitly and tile T as well
    # (persistent h/c scratch) instead of keeping the full sequence resident.
    return pl.pallas_call(
        noise_predictor_kernel,
        out_shape=jax.ShapeDtypeStruct((B, T, D), jnp.float32),
        grid=(B // b_block,),
        in_specs=[x_spec] + [vmem_full] * len(args),
        out_specs=pl.BlockSpec((b_block, T, D), lambda b: (b, 0, 0)),
        compiler_params=pltpu.CompilerParams(dimension_semantics=("parallel",)),
    )(noisy_trajectory, *args)


def make_params(key, hidden_dim, input_dim=3):
    H = hidden_dim
    ks = jax.random.split(key, 10)
    s = 1.0 / jnp.sqrt(H)

    def u(k, shape, scale):
        return jax.random.uniform(k, shape, jnp.float32, -scale, scale)

    return {
        # LSTM (stored transposed vs. torch: (in, 4H) / (H, 4H)); gate order i, f, g, o.
        "wih": u(ks[0], (input_dim, 4 * H), s),
        "whh": u(ks[1], (H, 4 * H), s),
        "bih": u(ks[2], (4 * H,), s),
        "bhh": u(ks[3], (4 * H,), s),
        # LayerNorm (torch defaults)
        "gamma": jnp.ones((H,), jnp.float32),
        "beta": jnp.zeros((H,), jnp.float32),
        # fc1 / fc2 / fc3 (stored as (in, out))
        "w1": u(ks[4], (H, H // 2), 1.0 / jnp.sqrt(H)),
        "b1": u(ks[5], (H // 2,), 1.0 / jnp.sqrt(H)),
        "w2": u(ks[6], (H // 2, H // 4), 1.0 / jnp.sqrt(H // 2)),
        "b2": u(ks[7], (H // 4,), 1.0 / jnp.sqrt(H // 2)),
        "w3": u(ks[8], (H // 4, 3), 1.0 / jnp.sqrt(H // 4)),
        "b3": u(ks[9], (3,), 1.0 / jnp.sqrt(H // 4)),
    }


def reference_forward(x, p):
    """Pure-JAX reference mirroring the kernel numerics (f32 input projection, bf16
    matmul operands with f32 accumulation); matches the PyTorch module semantics up to
    bf16 operand rounding of the MXU matmuls."""
    B, T, D = x.shape
    H = p["whh"].shape[0]
    Hq = H // 4
    wih = p["wih"]
    whh_b = p["whh"].astype(jnp.bfloat16)
    bias = (p["bih"] + p["bhh"]).reshape(1, 4 * H)

    xw = (x[:, :, 0:1] * wih[0:1, :] + x[:, :, 1:2] * wih[1:2, :]
          + x[:, :, 2:3] * wih[2:3, :] + bias)                        # (B, T, 4H) f32

    h = jnp.zeros((B, H), jnp.float32)
    c = jnp.zeros((B, H), jnp.float32)
    hs = []
    for t in range(T):
        pre = xw[:, t, :] + jnp.dot(h.astype(jnp.bfloat16), whh_b,
                                    preferred_element_type=jnp.float32)
        sig = jax.nn.sigmoid(pre)
        tnh = jnp.tanh(pre)
        i = sig[:, 0 * H:1 * H]
        f = sig[:, 1 * H:2 * H]
        g = tnh[:, 2 * H:3 * H]
        o = sig[:, 3 * H:4 * H]
        c = f * c + i * g
        h = o * jnp.tanh(c)
        hs.append(h)
    hseq = jnp.stack(hs, axis=1).reshape(B * T, H)

    mu = hseq.mean(-1, keepdims=True)
    var = ((hseq - mu) ** 2).mean(-1, keepdims=True)
    ln = (hseq - mu) * lax.rsqrt(var + EPS) * p["gamma"] + p["beta"]

    r1 = jax.nn.relu(jnp.dot(ln.astype(jnp.bfloat16), p["w1"].astype(jnp.bfloat16),
                             preferred_element_type=jnp.float32) + p["b1"])
    r2 = jax.nn.relu(jnp.dot(r1.astype(jnp.bfloat16), p["w2"].astype(jnp.bfloat16),
                             preferred_element_type=jnp.float32) + p["b2"])
    xr = r2 + ln[:, :Hq]
    pred = jnp.dot(xr.astype(jnp.bfloat16), p["w3"].astype(jnp.bfloat16),
                   preferred_element_type=jnp.float32) + p["b3"]
    return pred.reshape(B, T, D) + x


if __name__ == "__main__":
    B, T, H = 2, 8, 32
    key = jax.random.PRNGKey(0)
    k_x, k_p = jax.random.split(key)

    noisy_trajectory = jax.random.normal(k_x, (B, T, 3), jnp.float32)
    params = make_params(k_p, H)

    out = noise_predictor_lstm(noisy_trajectory, params, b_block=1)
    out = jax.block_until_ready(out)

    ref = reference_forward(noisy_trajectory, params)
    assert out.shape == (B, T, 3)
    err = jnp.max(jnp.abs(out - ref))
    assert jnp.allclose(out, ref, atol=1e-3, rtol=1e-3), f"max abs diff {err}"
    print("KERNEL_OK")
</pallas_src>

<mosaic_0001>
module attributes {stable_mosaic.version = 11 : i64} {
  func.func @noise_predictor_kernel(%arg0: i32, %arg1: memref<1x8x3xf32, #tpu.memory_space<vmem>>, %arg2: memref<3x128xf32, #tpu.memory_space<vmem>>, %arg3: memref<32x128xbf16, #tpu.memory_space<vmem>>, %arg4: memref<1x128xf32, #tpu.memory_space<vmem>>, %arg5: memref<1x32xf32, #tpu.memory_space<vmem>>, %arg6: memref<1x32xf32, #tpu.memory_space<vmem>>, %arg7: memref<32x16xbf16, #tpu.memory_space<vmem>>, %arg8: memref<1x16xf32, #tpu.memory_space<vmem>>, %arg9: memref<16x8xbf16, #tpu.memory_space<vmem>>, %arg10: memref<1x8xf32, #tpu.memory_space<vmem>>, %arg11: memref<8x3xbf16, #tpu.memory_space<vmem>>, %arg12: memref<1x3xf32, #tpu.memory_space<vmem>>, %arg13: memref<1x8x3xf32, #tpu.memory_space<vmem>>) attributes {dimension_semantics = [#tpu.dimension_semantics<parallel>], iteration_bounds = array<i64: 2>, scalar_prefetch = 0 : i64, scratch_operands = 0 : i64, tpu.core_type = #tpu.core_type<tc>, window_params = [{transform_indices = @transform_0, window_bounds = array<i64: 1, 8, 3>}, {pipeline_mode = #tpu.pipeline_mode<synchronous>, transform_indices = @transform_1, window_bounds = array<i64: 3, 128>}, {pipeline_mode = #tpu.pipeline_mode<synchronous>, transform_indices = @transform_2, window_bounds = array<i64: 32, 128>}, {pipeline_mode = #tpu.pipeline_mode<synchronous>, transform_indices = @transform_3, window_bounds = array<i64: 1, 128>}, {pipeline_mode = #tpu.pipeline_mode<synchronous>, transform_indices = @transform_4, window_bounds = array<i64: 1, 32>}, {pipeline_mode = #tpu.pipeline_mode<synchronous>, transform_indices = @transform_5, window_bounds = array<i64: 1, 32>}, {pipeline_mode = #tpu.pipeline_mode<synchronous>, transform_indices = @transform_6, window_bounds = array<i64: 32, 16>}, {pipeline_mode = #tpu.pipeline_mode<synchronous>, transform_indices = @transform_7, window_bounds = array<i64: 1, 16>}, {pipeline_mode = #tpu.pipeline_mode<synchronous>, transform_indices = @transform_8, window_bounds = array<i64: 16, 8>}, {pipeline_mode = #tpu.pipeline_mode<synchronous>, transform_indices = @transform_9, window_bounds = array<i64: 1, 8>}, {pipeline_mode = #tpu.pipeline_mode<synchronous>, transform_indices = @transform_10, window_bounds = array<i64: 8, 3>}, {pipeline_mode = #tpu.pipeline_mode<synchronous>, transform_indices = @transform_11, window_bounds = array<i64: 1, 3>}, {transform_indices = @transform_12, window_bounds = array<i64: 1, 8, 3>}]} {
    %c0 = arith.constant 0 : index
    %c0_0 = arith.constant 0 : index
    %c0_1 = arith.constant 0 : index
    %0 = vector.load %arg1[%c0, %c0_0, %c0_1] : memref<1x8x3xf32, #tpu.memory_space<vmem>>, vector<1x8x3xf32>
    %c0_2 = arith.constant 0 : index
    %c0_3 = arith.constant 0 : index
    %1 = vector.load %arg2[%c0_2, %c0_3] : memref<3x128xf32, #tpu.memory_space<vmem>>, vector<3x128xf32>
    %2 = vector.extract_strided_slice %0 {offsets = [0, 0, 0], sizes = [1, 8, 1], strides = [1, 1, 1]} : vector<1x8x3xf32> to vector<1x8x1xf32>
    %3 = vector.extract_strided_slice %1 {offsets = [0, 0], sizes = [1, 128], strides = [1, 1]} : vector<3x128xf32> to vector<1x128xf32>
    %4 = vector.shape_cast %3 : vector<1x128xf32> to vector<1x1x128xf32>
    %5 = vector.broadcast %2 : vector<1x8x1xf32> to vector<1x8x128xf32>
    %6 = vector.broadcast %4 : vector<1x1x128xf32> to vector<1x8x128xf32>
    %7 = arith.mulf %5, %6 : vector<1x8x128xf32>
    %8 = vector.extract_strided_slice %0 {offsets = [0, 0, 1], sizes = [1, 8, 1], strides = [1, 1, 1]} : vector<1x8x3xf32> to vector<1x8x1xf32>
    %9 = vector.extract_strided_slice %1 {offsets = [1, 0], sizes = [1, 128], strides = [1, 1]} : vector<3x128xf32> to vector<1x128xf32>
    %10 = vector.shape_cast %9 : vector<1x128xf32> to vector<1x1x128xf32>
    %11 = vector.broadcast %8 : vector<1x8x1xf32> to vector<1x8x128xf32>
    %12 = vector.broadcast %10 : vector<1x1x128xf32> to vector<1x8x128xf32>
    %13 = arith.mulf %11, %12 : vector<1x8x128xf32>
    %14 = arith.addf %7, %13 : vector<1x8x128xf32>
    %15 = vector.extract_strided_slice %0 {offsets = [0, 0, 2], sizes = [1, 8, 1], strides = [1, 1, 1]} : vector<1x8x3xf32> to vector<1x8x1xf32>
    %16 = vector.extract_strided_slice %1 {offsets = [2, 0], sizes = [1, 128], strides = [1, 1]} : vector<3x128xf32> to vector<1x128xf32>
    %17 = vector.shape_cast %16 : vector<1x128xf32> to vector<1x1x128xf32>
    %18 = vector.broadcast %15 : vector<1x8x1xf32> to vector<1x8x128xf32>
    %19 = vector.broadcast %17 : vector<1x1x128xf32> to vector<1x8x128xf32>
    %20 = arith.mulf %18, %19 : vector<1x8x128xf32>
    %21 = arith.addf %14, %20 : vector<1x8x128xf32>
    %c0_4 = arith.constant 0 : index
    %c0_5 = arith.constant 0 : index
    %22 = vector.load %arg4[%c0_4, %c0_5] : memref<1x128xf32, #tpu.memory_space<vmem>>, vector<1x128xf32>
    %23 = vector.shape_cast %22 : vector<1x128xf32> to vector<1x1x128xf32>
    %24 = vector.broadcast %23 : vector<1x1x128xf32> to vector<1x8x128xf32>
    %25 = arith.addf %21, %24 : vector<1x8x128xf32>
    %26 = vector.extract_strided_slice %25 {offsets = [0, 0, 0], sizes = [1, 1, 128], strides = [1, 1, 1]} : vector<1x8x128xf32> to vector<1x1x128xf32>
    %27 = vector.shape_cast %26 : vector<1x1x128xf32> to vector<1x128xf32>
    %28 = vector.extract_strided_slice %25 {offsets = [0, 1, 0], sizes = [1, 1, 128], strides = [1, 1, 1]} : vector<1x8x128xf32> to vector<1x1x128xf32>
    %29 = vector.shape_cast %28 : vector<1x1x128xf32> to vector<1x128xf32>
    %30 = vector.extract_strided_slice %25 {offsets = [0, 2, 0], sizes = [1, 1, 128], strides = [1, 1, 1]} : vector<1x8x128xf32> to vector<1x1x128xf32>
    %31 = vector.shape_cast %30 : vector<1x1x128xf32> to vector<1x128xf32>
    %32 = vector.extract_strided_slice %25 {offsets = [0, 3, 0], sizes = [1, 1, 128], strides = [1, 1, 1]} : vector<1x8x128xf32> to vector<1x1x128xf32>
    %33 = vector.shape_cast %32 : vector<1x1x128xf32> to vector<1x128xf32>
    %34 = vector.extract_strided_slice %25 {offsets = [0, 4, 0], sizes = [1, 1, 128], strides = [1, 1, 1]} : vector<1x8x128xf32> to vector<1x1x128xf32>
    %35 = vector.shape_cast %34 : vector<1x1x128xf32> to vector<1x128xf32>
    %36 = vector.extract_strided_slice %25 {offsets = [0, 5, 0], sizes = [1, 1, 128], strides = [1, 1, 1]} : vector<1x8x128xf32> to vector<1x1x128xf32>
    %37 = vector.shape_cast %36 : vector<1x1x128xf32> to vector<1x128xf32>
    %38 = vector.extract_strided_slice %25 {offsets = [0, 6, 0], sizes = [1, 1, 128], strides = [1, 1, 1]} : vector<1x8x128xf32> to vector<1x1x128xf32>
    %39 = vector.shape_cast %38 : vector<1x1x128xf32> to vector<1x128xf32>
    %40 = vector.extract_strided_slice %25 {offsets = [0, 7, 0], sizes = [1, 1, 128], strides = [1, 1, 1]} : vector<1x8x128xf32> to vector<1x1x128xf32>
    %41 = vector.shape_cast %40 : vector<1x1x128xf32> to vector<1x128xf32>
    %c0_6 = arith.constant 0 : index
    %c0_7 = arith.constant 0 : index
    %42 = vector.load %arg3[%c0_6, %c0_7] : memref<32x128xbf16, #tpu.memory_space<vmem>>, vector<32x128xbf16>
    %cst = arith.constant 0.000000e+00 : f32
    %43 = vector.broadcast %cst : f32 to vector<1x32xf32>
    %cst_8 = arith.constant 0.000000e+00 : f32
    %44 = vector.broadcast %cst_8 : f32 to vector<1x32xf32>
    %45 = arith.truncf %43 : vector<1x32xf32> to vector<1x32xbf16>
    %cst_9 = arith.constant dense<0.000000e+00> : vector<1x128xf32>
    %46 = tpu.matmul %45, %42, %cst_9 {dimension_numbers = #tpu.dot_dimension_numbers<[1], [0], [0], [1], [0, 0, 1, 1], [], []>} : vector<1x32xbf16>, vector<32x128xbf16>, vector<1x128xf32> -> vector<1x128xf32>
    %47 = arith.addf %27, %46 : vector<1x128xf32>
    %48 = arith.negf %47 : vector<1x128xf32>
    %49 = math.exp %48 : vector<1x128xf32>
    %cst_10 = arith.constant 1.000000e+00 : f32
    %50 = vector.broadcast %cst_10 : f32 to vector<1x128xf32>
    %51 = arith.addf %50, %49 : vector<1x128xf32>
    %52 = arith.divf %50, %51 : vector<1x128xf32>
    %53 = math.tanh %47 : vector<1x128xf32>
    %54 = vector.extract_strided_slice %52 {offsets = [0, 0], sizes = [1, 32], strides = [1, 1]} : vector<1x128xf32> to vector<1x32xf32>
    %55 = vector.extract_strided_slice %52 {offsets = [0, 32], sizes = [1, 32], strides = [1, 1]} : vector<1x128xf32> to vector<1x32xf32>
    %56 = vector.extract_strided_slice %53 {offsets = [0, 64], sizes = [1, 32], strides = [1, 1]} : vector<1x128xf32> to vector<1x32xf32>
    %57 = vector.extract_strided_slice %52 {offsets = [0, 96], sizes = [1, 32], strides = [1, 1]} : vector<1x128xf32> to vector<1x32xf32>
    %58 = arith.mulf %55, %44 : vector<1x32xf32>
    %59 = arith.mulf %54, %56 : vector<1x32xf32>
    %60 = arith.addf %58, %59 : vector<1x32xf32>
    %61 = math.tanh %60 : vector<1x32xf32>
    %62 = arith.mulf %57, %61 : vector<1x32xf32>
    %63 = arith.truncf %62 : vector<1x32xf32> to vector<1x32xbf16>
    %cst_11 = arith.constant dense<0.000000e+00> : vector<1x128xf32>
    %64 = tpu.matmul %63, %42, %cst_11 {dimension_numbers = #tpu.dot_dimension_numbers<[1], [0], [0], [1], [0, 0, 1, 1], [], []>} : vector<1x32xbf16>, vector<32x128xbf16>, vector<1x128xf32> -> vector<1x128xf32>
    %65 = arith.addf %29, %64 : vector<1x128xf32>
    %66 = arith.negf %65 : vector<1x128xf32>
    %67 = math.exp %66 : vector<1x128xf32>
    %cst_12 = arith.constant 1.000000e+00 : f32
    %68 = vector.broadcast %cst_12 : f32 to vector<1x128xf32>
    %69 = arith.addf %68, %67 : vector<1x128xf32>
    %70 = arith.divf %68, %69 : vector<1x128xf32>
    %71 = math.tanh %65 : vector<1x128xf32>
    %72 = vector.extract_strided_slice %70 {offsets = [0, 0], sizes = [1, 32], strides = [1, 1]} : vector<1x128xf32> to vector<1x32xf32>
    %73 = vector.extract_strided_slice %70 {offsets = [0, 32], sizes = [1, 32], strides = [1, 1]} : vector<1x128xf32> to vector<1x32xf32>
    %74 = vector.extract_strided_slice %71 {offsets = [0, 64], sizes = [1, 32], strides = [1, 1]} : vector<1x128xf32> to vector<1x32xf32>
    %75 = vector.extract_strided_slice %70 {offsets = [0, 96], sizes = [1, 32], strides = [1, 1]} : vector<1x128xf32> to vector<1x32xf32>
    %76 = arith.mulf %73, %60 : vector<1x32xf32>
    %77 = arith.mulf %72, %74 : vector<1x32xf32>
    %78 = arith.addf %76, %77 : vector<1x32xf32>
    %79 = math.tanh %78 : vector<1x32xf32>
    %80 = arith.mulf %75, %79 : vector<1x32xf32>
    %81 = arith.truncf %80 : vector<1x32xf32> to vector<1x32xbf16>
    %cst_13 = arith.constant dense<0.000000e+00> : vector<1x128xf32>
    %82 = tpu.matmul %81, %42, %cst_13 {dimension_numbers = #tpu.dot_dimension_numbers<[1], [0], [0], [1], [0, 0, 1, 1], [], []>} : vector<1x32xbf16>, vector<32x128xbf16>, vector<1x128xf32> -> vector<1x128xf32>
    %83 = arith.addf %31, %82 : vector<1x128xf32>
    %84 = arith.negf %83 : vector<1x128xf32>
    %85 = math.exp %84 : vector<1x128xf32>
    %cst_14 = arith.constant 1.000000e+00 : f32
    %86 = vector.broadcast %cst_14 : f32 to vector<1x128xf32>
    %87 = arith.addf %86, %85 : vector<1x128xf32>
    %88 = arith.divf %86, %87 : vector<1x128xf32>
    %89 = math.tanh %83 : vector<1x128xf32>
    %90 = vector.extract_strided_slice %88 {offsets = [0, 0], sizes = [1, 32], strides = [1, 1]} : vector<1x128xf32> to vector<1x32xf32>
    %91 = vector.extract_strided_slice %88 {offsets = [0, 32], sizes = [1, 32], strides = [1, 1]} : vector<1x128xf32> to vector<1x32xf32>
    %92 = vector.extract_strided_slice %89 {offsets = [0, 64], sizes = [1, 32], strides = [1, 1]} : vector<1x128xf32> to vector<1x32xf32>
    %93 = vector.extract_strided_slice %88 {offsets = [0, 96], sizes = [1, 32], strides = [1, 1]} : vector<1x128xf32> to vector<1x32xf32>
    %94 = arith.mulf %91, %78 : vector<1x32xf32>
    %95 = arith.mulf %90, %92 : vector<1x32xf32>
    %96 = arith.addf %94, %95 : vector<1x32xf32>
    %97 = math.tanh %96 : vector<1x32xf32>
    %98 = arith.mulf %93, %97 : vector<1x32xf32>
    %99 = arith.truncf %98 : vector<1x32xf32> to vector<1x32xbf16>
    %cst_15 = arith.constant dense<0.000000e+00> : vector<1x128xf32>
    %100 = tpu.matmul %99, %42, %cst_15 {dimension_numbers = #tpu.dot_dimension_numbers<[1], [0], [0], [1], [0, 0, 1, 1], [], []>} : vector<1x32xbf16>, vector<32x128xbf16>, vector<1x128xf32> -> vector<1x128xf32>
    %101 = arith.addf %33, %100 : vector<1x128xf32>
    %102 = arith.negf %101 : vector<1x128xf32>
    %103 = math.exp %102 : vector<1x128xf32>
    %cst_16 = arith.constant 1.000000e+00 : f32
    %104 = vector.broadcast %cst_16 : f32 to vector<1x128xf32>
    %105 = arith.addf %104, %103 : vector<1x128xf32>
    %106 = arith.divf %104, %105 : vector<1x128xf32>
    %107 = math.tanh %101 : vector<1x128xf32>
    %108 = vector.extract_strided_slice %106 {offsets = [0, 0], sizes = [1, 32], strides = [1, 1]} : vector<1x128xf32> to vector<1x32xf32>
    %109 = vector.extract_strided_slice %106 {offsets = [0, 32], sizes = [1, 32], strides = [1, 1]} : vector<1x128xf32> to vector<1x32xf32>
    %110 = vector.extract_strided_slice %107 {offsets = [0, 64], sizes = [1, 32], strides = [1, 1]} : vector<1x128xf32> to vector<1x32xf32>
    %111 = vector.extract_strided_slice %106 {offsets = [0, 96], sizes = [1, 32], strides = [1, 1]} : vector<1x128xf32> to vector<1x32xf32>
    %112 = arith.mulf %109, %96 : vector<1x32xf32>
    %113 = arith.mulf %108, %110 : vector<1x32xf32>
    %114 = arith.addf %112, %113 : vector<1x32xf32>
    %115 = math.tanh %114 : vector<1x32xf32>
    %116 = arith.mulf %111, %115 : vector<1x32xf32>
    %117 = arith.truncf %116 : vector<1x32xf32> to vector<1x32xbf16>
    %cst_17 = arith.constant dense<0.000000e+00> : vector<1x128xf32>
    %118 = tpu.matmul %117, %42, %cst_17 {dimension_numbers = #tpu.dot_dimension_numbers<[1], [0], [0], [1], [0, 0, 1, 1], [], []>} : vector<1x32xbf16>, vector<32x128xbf16>, vector<1x128xf32> -> vector<1x128xf32>
    %119 = arith.addf %35, %118 : vector<1x128xf32>
    %120 = arith.negf %119 : vector<1x128xf32>
    %121 = math.exp %120 : vector<1x128xf32>
    %cst_18 = arith.constant 1.000000e+00 : f32
    %122 = vector.broadcast %cst_18 : f32 to vector<1x128xf32>
    %123 = arith.addf %122, %121 : vector<1x128xf32>
    %124 = arith.divf %122, %123 : vector<1x128xf32>
    %125 = math.tanh %119 : vector<1x128xf32>
    %126 = vector.extract_strided_slice %124 {offsets = [0, 0], sizes = [1, 32], strides = [1, 1]} : vector<1x128xf32> to vector<1x32xf32>
    %127 = vector.extract_strided_slice %124 {offsets = [0, 32], sizes = [1, 32], strides = [1, 1]} : vector<1x128xf32> to vector<1x32xf32>
    %128 = vector.extract_strided_slice %125 {offsets = [0, 64], sizes = [1, 32], strides = [1, 1]} : vector<1x128xf32> to vector<1x32xf32>
    %129 = vector.extract_strided_slice %124 {offsets = [0, 96], sizes = [1, 32], strides = [1, 1]} : vector<1x128xf32> to vector<1x32xf32>
    %130 = arith.mulf %127, %114 : vector<1x32xf32>
    %131 = arith.mulf %126, %128 : vector<1x32xf32>
    %132 = arith.addf %130, %131 : vector<1x32xf32>
    %133 = math.tanh %132 : vector<1x32xf32>
    %134 = arith.mulf %129, %133 : vector<1x32xf32>
    %135 = arith.truncf %134 : vector<1x32xf32> to vector<1x32xbf16>
    %cst_19 = arith.constant dense<0.000000e+00> : vector<1x128xf32>
    %136 = tpu.matmul %135, %42, %cst_19 {dimension_numbers = #tpu.dot_dimension_numbers<[1], [0], [0], [1], [0, 0, 1, 1], [], []>} : vector<1x32xbf16>, vector<32x128xbf16>, vector<1x128xf32> -> vector<1x128xf32>
    %137 = arith.addf %37, %136 : vector<1x128xf32>
    %138 = arith.negf %137 : vector<1x128xf32>
    %139 = math.exp %138 : vector<1x128xf32>
    %cst_20 = arith.constant 1.000000e+00 : f32
    %140 = vector.broadcast %cst_20 : f32 to vector<1x128xf32>
    %141 = arith.addf %140, %139 : vector<1x128xf32>
    %142 = arith.divf %140, %141 : vector<1x128xf32>
    %143 = math.tanh %137 : vector<1x128xf32>
    %144 = vector.extract_strided_slice %142 {offsets = [0, 0], sizes = [1, 32], strides = [1, 1]} : vector<1x128xf32> to vector<1x32xf32>
    %145 = vector.extract_strided_slice %142 {offsets = [0, 32], sizes = [1, 32], strides = [1, 1]} : vector<1x128xf32> to vector<1x32xf32>
    %146 = vector.extract_strided_slice %143 {offsets = [0, 64], sizes = [1, 32], strides = [1, 1]} : vector<1x128xf32> to vector<1x32xf32>
    %147 = vector.extract_strided_slice %142 {offsets = [0, 96], sizes = [1, 32], strides = [1, 1]} : vector<1x128xf32> to vector<1x32xf32>
    %148 = arith.mulf %145, %132 : vector<1x32xf32>
    %149 = arith.mulf %144, %146 : vector<1x32xf32>
    %150 = arith.addf %148, %149 : vector<1x32xf32>
    %151 = math.tanh %150 : vector<1x32xf32>
    %152 = arith.mulf %147, %151 : vector<1x32xf32>
    %153 = arith.truncf %152 : vector<1x32xf32> to vector<1x32xbf16>
    %cst_21 = arith.constant dense<0.000000e+00> : vector<1x128xf32>
    %154 = tpu.matmul %153, %42, %cst_21 {dimension_numbers = #tpu.dot_dimension_numbers<[1], [0], [0], [1], [0, 0, 1, 1], [], []>} : vector<1x32xbf16>, vector<32x128xbf16>, vector<1x128xf32> -> vector<1x128xf32>
    %155 = arith.addf %39, %154 : vector<1x128xf32>
    %156 = arith.negf %155 : vector<1x128xf32>
    %157 = math.exp %156 : vector<1x128xf32>
    %cst_22 = arith.constant 1.000000e+00 : f32
    %158 = vector.broadcast %cst_22 : f32 to vector<1x128xf32>
    %159 = arith.addf %158, %157 : vector<1x128xf32>
    %160 = arith.divf %158, %159 : vector<1x128xf32>
    %161 = math.tanh %155 : vector<1x128xf32>
    %162 = vector.extract_strided_slice %160 {offsets = [0, 0], sizes = [1, 32], strides = [1, 1]} : vector<1x128xf32> to vector<1x32xf32>
    %163 = vector.extract_strided_slice %160 {offsets = [0, 32], sizes = [1, 32], strides = [1, 1]} : vector<1x128xf32> to vector<1x32xf32>
    %164 = vector.extract_strided_slice %161 {offsets = [0, 64], sizes = [1, 32], strides = [1, 1]} : vector<1x128xf32> to vector<1x32xf32>
    %165 = vector.extract_strided_slice %160 {offsets = [0, 96], sizes = [1, 32], strides = [1, 1]} : vector<1x128xf32> to vector<1x32xf32>
    %166 = arith.mulf %163, %150 : vector<1x32xf32>
    %167 = arith.mulf %162, %164 : vector<1x32xf32>
    %168 = arith.addf %166, %167 : vector<1x32xf32>
    %169 = math.tanh %168 : vector<1x32xf32>
    %170 = arith.mulf %165, %169 : vector<1x32xf32>
    %171 = arith.truncf %170 : vector<1x32xf32> to vector<1x32xbf16>
    %cst_23 = arith.constant dense<0.000000e+00> : vector<1x128xf32>
    %172 = tpu.matmul %171, %42, %cst_23 {dimension_numbers = #tpu.dot_dimension_numbers<[1], [0], [0], [1], [0, 0, 1, 1], [], []>} : vector<1x32xbf16>, vector<32x128xbf16>, vector<1x128xf32> -> vector<1x128xf32>
    %173 = arith.addf %41, %172 : vector<1x128xf32>
    %174 = arith.negf %173 : vector<1x128xf32>
    %175 = math.exp %174 : vector<1x128xf32>
    %cst_24 = arith.constant 1.000000e+00 : f32
    %176 = vector.broadcast %cst_24 : f32 to vector<1x128xf32>
    %177 = arith.addf %176, %175 : vector<1x128xf32>
    %178 = arith.divf %176, %177 : vector<1x128xf32>
    %179 = math.tanh %173 : vector<1x128xf32>
    %180 = vector.extract_strided_slice %178 {offsets = [0, 0], sizes = [1, 32], strides = [1, 1]} : vector<1x128xf32> to vector<1x32xf32>
    %181 = vector.extract_strided_slice %178 {offsets = [0, 32], sizes = [1, 32], strides = [1, 1]} : vector<1x128xf32> to vector<1x32xf32>
    %182 = vector.extract_strided_slice %179 {offsets = [0, 64], sizes = [1, 32], strides = [1, 1]} : vector<1x128xf32> to vector<1x32xf32>
    %183 = vector.extract_strided_slice %178 {offsets = [0, 96], sizes = [1, 32], strides = [1, 1]} : vector<1x128xf32> to vector<1x32xf32>
    %184 = arith.mulf %181, %168 : vector<1x32xf32>
    %185 = arith.mulf %180, %182 : vector<1x32xf32>
    %186 = arith.addf %184, %185 : vector<1x32xf32>
    %187 = math.tanh %186 : vector<1x32xf32>
    %188 = arith.mulf %183, %187 : vector<1x32xf32>
    %189 = vector.shape_cast %62 : vector<1x32xf32> to vector<1x1x32xf32>
    %190 = vector.shape_cast %80 : vector<1x32xf32> to vector<1x1x32xf32>
    %191 = vector.shape_cast %98 : vector<1x32xf32> to vector<1x1x32xf32>
    %192 = vector.shape_cast %116 : vector<1x32xf32> to vector<1x1x32xf32>
    %193 = vector.shape_cast %134 : vector<1x32xf32> to vector<1x1x32xf32>
    %194 = vector.shape_cast %152 : vector<1x32xf32> to vector<1x1x32xf32>
    %195 = vector.shape_cast %170 : vector<1x32xf32> to vector<1x1x32xf32>
    %196 = vector.shape_cast %188 : vector<1x32xf32> to vector<1x1x32xf32>
    %197 = tpu.concatenate %189, %190, %191, %192, %193, %194, %195, %196 in 1 : vector<1x1x32xf32>, vector<1x1x32xf32>, vector<1x1x32xf32>, vector<1x1x32xf32>, vector<1x1x32xf32>, vector<1x1x32xf32>, vector<1x1x32xf32>, vector<1x1x32xf32> -> vector<1x8x32xf32>
    %198 = vector.shape_cast %197 : vector<1x8x32xf32> to vector<8x32xf32>
    %cst_25 = arith.constant dense<0.000000e+00> : vector<8xf32>
    %199 = vector.multi_reduction <add>, %198, %cst_25 [1] : vector<8x32xf32> to vector<8xf32>
    %200 = vector.shape_cast %199 : vector<8xf32> to vector<8x1xf32>
    %cst_26 = arith.constant 3.200000e+01 : f32
    %201 = vector.broadcast %cst_26 : f32 to vector<8x1xf32>
    %202 = arith.divf %200, %201 : vector<8x1xf32>
    %203 = vector.broadcast %202 : vector<8x1xf32> to vector<8x32xf32>
    %204 = arith.subf %198, %203 : vector<8x32xf32>
    %205 = arith.mulf %204, %204 : vector<8x32xf32>
    %cst_27 = arith.constant dense<0.000000e+00> : vector<8xf32>
    %206 = vector.multi_reduction <add>, %205, %cst_27 [1] : vector<8x32xf32> to vector<8xf32>
    %207 = vector.shape_cast %206 : vector<8xf32> to vector<8x1xf32>
    %cst_28 = arith.constant 3.200000e+01 : f32
    %208 = vector.broadcast %cst_28 : f32 to vector<8x1xf32>
    %209 = arith.divf %207, %208 : vector<8x1xf32>
    %210 = vector.broadcast %202 : vector<8x1xf32> to vector<8x32xf32>
    %211 = arith.subf %198, %210 : vector<8x32xf32>
    %cst_29 = arith.constant 9.99999974E-6 : f32
    %212 = vector.broadcast %cst_29 : f32 to vector<8x1xf32>
    %213 = arith.addf %209, %212 : vector<8x1xf32>
    %214 = math.rsqrt %213 : vector<8x1xf32>
    %215 = vector.broadcast %214 : vector<8x1xf32> to vector<8x32xf32>
    %216 = arith.mulf %211, %215 : vector<8x32xf32>
    %c0_30 = arith.constant 0 : index
    %c0_31 = arith.constant 0 : index
    %217 = vector.load %arg5[%c0_30, %c0_31] : memref<1x32xf32, #tpu.memory_space<vmem>>, vector<1x32xf32>
    %218 = vector.broadcast %217 : vector<1x32xf32> to vector<8x32xf32>
    %219 = arith.mulf %216, %218 : vector<8x32xf32>
    %c0_32 = arith.constant 0 : index
    %c0_33 = arith.constant 0 : index
    %220 = vector.load %arg6[%c0_32, %c0_33] : memref<1x32xf32, #tpu.memory_space<vmem>>, vector<1x32xf32>
    %221 = vector.broadcast %220 : vector<1x32xf32> to vector<8x32xf32>
    %222 = arith.addf %219, %221 : vector<8x32xf32>
    %223 = arith.truncf %222 : vector<8x32xf32> to vector<8x32xbf16>
    %c0_34 = arith.constant 0 : index
    %c0_35 = arith.constant 0 : index
    %224 = vector.load %arg7[%c0_34, %c0_35] : memref<32x16xbf16, #tpu.memory_space<vmem>>, vector<32x16xbf16>
    %cst_36 = arith.constant dense<0.000000e+00> : vector<8x16xf32>
    %225 = tpu.matmul %223, %224, %cst_36 {dimension_numbers = #tpu.dot_dimension_numbers<[1], [0], [0], [1], [0, 0, 1, 1], [], []>} : vector<8x32xbf16>, vector<32x16xbf16>, vector<8x16xf32> -> vector<8x16xf32>
    %c0_37 = arith.constant 0 : index
    %c0_38 = arith.constant 0 : index
    %226 = vector.load %arg8[%c0_37, %c0_38] : memref<1x16xf32, #tpu.memory_space<vmem>>, vector<1x16xf32>
    %227 = vector.broadcast %226 : vector<1x16xf32> to vector<8x16xf32>
    %228 = arith.addf %225, %227 : vector<8x16xf32>
    %cst_39 = arith.constant 0.000000e+00 : f32
    %229 = vector.broadcast %cst_39 : f32 to vector<8x16xf32>
    %230 = arith.maximumf %228, %229 : vector<8x16xf32>
    %231 = arith.truncf %230 : vector<8x16xf32> to vector<8x16xbf16>
    %c0_40 = arith.constant 0 : index
    %c0_41 = arith.constant 0 : index
    %232 = vector.load %arg9[%c0_40, %c0_41] : memref<16x8xbf16, #tpu.memory_space<vmem>>, vector<16x8xbf16>
    %cst_42 = arith.constant dense<0.000000e+00> : vector<8x8xf32>
    %233 = tpu.matmul %231, %232, %cst_42 {dimension_numbers = #tpu.dot_dimension_numbers<[1], [0], [0], [1], [0, 0, 1, 1], [], []>} : vector<8x16xbf16>, vector<16x8xbf16>, vector<8x8xf32> -> vector<8x8xf32>
    %c0_43 = arith.constant 0 : index
    %c0_44 = arith.constant 0 : index
    %234 = vector.load %arg10[%c0_43, %c0_44] : memref<1x8xf32, #tpu.memory_space<vmem>>, vector<1x8xf32>
    %235 = vector.broadcast %234 : vector<1x8xf32> to vector<8x8xf32>
    %236 = arith.addf %233, %235 : vector<8x8xf32>
    %cst_45 = arith.constant 0.000000e+00 : f32
    %237 = vector.broadcast %cst_45 : f32 to vector<8x8xf32>
    %238 = arith.maximumf %236, %237 : vector<8x8xf32>
    %239 = vector.extract_strided_slice %222 {offsets = [0, 0], sizes = [8, 8], strides = [1, 1]} : vector<8x32xf32> to vector<8x8xf32>
    %240 = arith.addf %238, %239 : vector<8x8xf32>
    %241 = arith.truncf %240 : vector<8x8xf32> to vector<8x8xbf16>
    %c0_46 = arith.constant 0 : index
    %c0_47 = arith.constant 0 : index
    %242 = vector.load %arg11[%c0_46, %c0_47] : memref<8x3xbf16, #tpu.memory_space<vmem>>, vector<8x3xbf16>
    %cst_48 = arith.constant dense<0.000000e+00> : vector<8x3xf32>
    %243 = tpu.matmul %241, %242, %cst_48 {dimension_numbers = #tpu.dot_dimension_numbers<[1], [0], [0], [1], [0, 0, 1, 1], [], []>} : vector<8x8xbf16>, vector<8x3xbf16>, vector<8x3xf32> -> vector<8x3xf32>
    %c0_49 = arith.constant 0 : index
    %c0_50 = arith.constant 0 : index
    %244 = vector.load %arg12[%c0_49, %c0_50] : memref<1x3xf32, #tpu.memory_space<vmem>>, vector<1x3xf32>
    %245 = vector.broadcast %244 : vector<1x3xf32> to vector<8x3xf32>
    %246 = arith.addf %243, %245 : vector<8x3xf32>
    %247 = vector.shape_cast %246 : vector<8x3xf32> to vector<1x8x3xf32>
    %248 = arith.addf %247, %0 : vector<1x8x3xf32>
    %c0_51 = arith.constant 0 : index
    %c0_52 = arith.constant 0 : index
    %c0_53 = arith.constant 0 : index
    %249 = vector.load %arg13[%c0_51, %c0_52, %c0_53] : memref<1x8x3xf32, #tpu.memory_space<vmem>>, vector<1x8x3xf32>
    tpu.vector_store %arg13[%c0_51, %c0_52, %c0_53], %248 {strides = array<i32>} : memref<1x8x3xf32, #tpu.memory_space<vmem>>, vector<1x8x3xf32>,
    return
  }
  func.func @transform_0(%arg0: i32) -> (i32, i32, i32) {
    %c0_i32 = arith.constant 0 : i32
    %c0_i32_0 = arith.constant 0 : i32
    %c0_i32_1 = arith.constant 0 : i32
    return %arg0, %c0_i32, %c0_i32_0 : i32, i32, i32
  }
  func.func @transform_1(%arg0: i32) -> (i32, i32) {
    %c0_i32 = arith.constant 0 : i32
    %c0_i32_0 = arith.constant 0 : i32
    %c0_i32_1 = arith.constant 0 : i32
    return %c0_i32, %c0_i32_0 : i32, i32
  }
  func.func @transform_2(%arg0: i32) -> (i32, i32) {
    %c0_i32 = arith.constant 0 : i32
    %c0_i32_0 = arith.constant 0 : i32
    %c0_i32_1 = arith.constant 0 : i32
    return %c0_i32, %c0_i32_0 : i32, i32
  }
  func.func @transform_3(%arg0: i32) -> (i32, i32) {
    %c0_i32 = arith.constant 0 : i32
    %c0_i32_0 = arith.constant 0 : i32
    %c0_i32_1 = arith.constant 0 : i32
    return %c0_i32, %c0_i32_0 : i32, i32
  }
  func.func @transform_4(%arg0: i32) -> (i32, i32) {
    %c0_i32 = arith.constant 0 : i32
    %c0_i32_0 = arith.constant 0 : i32
    %c0_i32_1 = arith.constant 0 : i32
    return %c0_i32, %c0_i32_0 : i32, i32
  }
  func.func @transform_5(%arg0: i32) -> (i32, i32) {
    %c0_i32 = arith.constant 0 : i32
    %c0_i32_0 = arith.constant 0 : i32
    %c0_i32_1 = arith.constant 0 : i32
    return %c0_i32, %c0_i32_0 : i32, i32
  }
  func.func @transform_6(%arg0: i32) -> (i32, i32) {
    %c0_i32 = arith.constant 0 : i32
    %c0_i32_0 = arith.constant 0 : i32
    %c0_i32_1 = arith.constant 0 : i32
    return %c0_i32, %c0_i32_0 : i32, i32
  }
  func.func @transform_7(%arg0: i32) -> (i32, i32) {
    %c0_i32 = arith.constant 0 : i32
    %c0_i32_0 = arith.constant 0 : i32
    %c0_i32_1 = arith.constant 0 : i32
    return %c0_i32, %c0_i32_0 : i32, i32
  }
  func.func @transform_8(%arg0: i32) -> (i32, i32) {
    %c0_i32 = arith.constant 0 : i32
    %c0_i32_0 = arith.constant 0 : i32
    %c0_i32_1 = arith.constant 0 : i32
    return %c0_i32, %c0_i32_0 : i32, i32
  }
  func.func @transform_9(%arg0: i32) -> (i32, i32) {
    %c0_i32 = arith.constant 0 : i32
    %c0_i32_0 = arith.constant 0 : i32
    %c0_i32_1 = arith.constant 0 : i32
    return %c0_i32, %c0_i32_0 : i32, i32
  }
  func.func @transform_10(%arg0: i32) -> (i32, i32) {
    %c0_i32 = arith.constant 0 : i32
    %c0_i32_0 = arith.constant 0 : i32
    %c0_i32_1 = arith.constant 0 : i32
    return %c0_i32, %c0_i32_0 : i32, i32
  }
  func.func @transform_11(%arg0: i32) -> (i32, i32) {
    %c0_i32 = arith.constant 0 : i32
    %c0_i32_0 = arith.constant 0 : i32
    %c0_i32_1 = arith.constant 0 : i32
    return %c0_i32, %c0_i32_0 : i32, i32
  }
  func.func @transform_12(%arg0: i32) -> (i32, i32, i32) {
    %c0_i32 = arith.constant 0 : i32
    %c0_i32_0 = arith.constant 0 : i32
    %c0_i32_1 = arith.constant 0 : i32
    return %arg0, %c0_i32, %c0_i32_0 : i32, i32, i32
  }
}

</mosaic_0001>

<bundles_post_ra>
// kernel: noise_predictor_lstm.1
= control target key start
LH: loop header
LB: loop body
LE: loop exit
PB: predicated region body
PF: predicated region fallthrough
CT: control target
= control target key end

     0   :  { %s1722_s21 = smov 0   ;;  %s1915_s0 = inlined_call_operand.vmem [shape: f32[2,8,3], index: 0, kind: input, shape index: {}]   ;;  %s1916_s1 = inlined_call_operand.vmem [shape: f32[3,128], index: 1, kind: input, shape index: {}]   ;;  %s1917_s2 = inlined_call_operand.vmem [shape: bf16[32,128], index: 2, kind: input, shape index: {}]   ;;  %s1918_s3 = inlined_call_operand.vmem [shape: f32[1,128], index: 3, kind: input, shape index: {}]   ;;  %s1919_s4 = inlined_call_operand.vmem [shape: f32[1,32], index: 4, kind: input, shape index: {}]   ;;  %s1920_s5 = inlined_call_operand.vmem [shape: f32[1,32], index: 5, kind: input, shape index: {}]   ;;  %s1921_s6 = inlined_call_operand.vmem [shape: bf16[32,16], index: 6, kind: input, shape index: {}]   ;;  %s1922_s7 = inlined_call_operand.vmem [shape: f32[1,16], index: 7, kind: input, shape index: {}]   ;;  %s1923_s8 = inlined_call_operand.vmem [shape: bf16[16,8], index: 8, kind: input, shape index: {}]   ;;  %s1924_s9 = inlined_call_operand.vmem [shape: f32[1,8], index: 9, kind: input, shape index: {}]   ;;  %s1925_s10 = inlined_call_operand.vmem [shape: bf16[8,3], index: 10, kind: input, shape index: {}]   ;;  %s1926_s11 = inlined_call_operand.vmem [shape: f32[1,3], index: 11, kind: input, shape index: {}]   ;;  %s1927_s12 = inlined_call_operand.vmem [shape: f32[2,8,3], index: 12, kind: output, shape index: {}]  }
   0x1 LB: > { %s1397_s22 = sadd.s32 4294967295, %s1647_s21   ;;  %p1401_p0 = scmp.ge.s32.totalorder %s1647_s21, 1  ;;  %s1647_s21 = sphi %s1722_s21, %s22_s21  }
   0x2   : > { %p361_p1 = scmp.lt.s32.totalorder %s1647_s21, 3 }
   0x4   : > { %p362_p2 = pnand %p1401_p0, %p361_p1 }
   0x5   : > { %v1733_v0 = vld [vmem:[%s1917_s2] sm:$0xff] (!%p362_p2)   ;;  %v1649_v1 = vmov (!%p362_p2), 0.0   ;;  %v1741_v2 = vld [vmem:[%s1917_s2 + $0x8] sm:$0xff] (!%p362_p2)   ;;  %vm1650_vm0 = vmmov (!%p362_p2), 0   ;;  %p401_p3 = scmp.lt.s32.totalorder (!%p362_p2), %s1397_s22, 1  ;;  %v1651_v3 = vmov (!%p362_p2), 0   ;;  %v417_v7 = vlaneseq (!%p362_p2) }
   0x6   : > { %365 = sbr.rel (%p362_p2) target bundleno = 6875 (0x1adb), region = 68  ;;  %1466 = vmatprep.subr.bf16.mxu0 (!%p362_p2), %v1649_v1  ;;  %1474 = vmatprep.subr.bf16.mxu1 (!%p362_p2), %v1649_v1  ;;  %v1652_v4 = vmov (!%p362_p2), 2   ;;  %v1653_v6 = vmov (!%p362_p2), 1   ;;  %v411_v12 = vld [vmem:[%s1916_s1] sm:$0x7] (!%p362_p2)  ;;  %s1654_s17 = smov (!%p362_p2), 64  }
   0x7   : > { %1467 = vmatpush3.bf16.msra.mxu0 (!%p362_p2), %v1733_v0  ;;  %1470 = vmatprep.mubr.msk.bf16.mxu0 (!%p362_p2), %vm1650_vm0, %v1649_v1  ;;  %v418_v8 = vshrl.u32 (!%p362_p2), %v417_v7, 7  ;;  %v1404_v24 = vld [vmem:[%s1918_s3] ss:$0 sm:$0xff] (!%p362_p2)  ;;  %s1655_s18 = smov (!%p362_p2), 32   ;;  %vm466_vm1 = vcmask (!%p362_p2), 261120   ;;  %vm1092_vm2 = vcmask (!%p362_p2), 1040384  }
   0x8   : > { %1468 = vmatprep.subr.bf16.mxu0 (!%p362_p2), %v1649_v1  ;;  %1566 = vset.pattern.permute.xlu0 (!%p362_p2), %v1651_v3  ;;  %vm1094_vm3 = vcmask (!%p362_p2), 1041408   ;;  %vm1096_vm4 = vcmask (!%p362_p2), 1042432   ;;  %vm1098_vm5 = vcmask (!%p362_p2), 1043456   ;;  %vm1100_vm6 = vcmask (!%p362_p2), 1044480   ;;  %s1656_s23 = smov (!%p362_p2), 96  }
   0x9   : > { %1568 = vset.pattern.permute.xlu1 (!%p362_p2), %v1652_v4  ;;  %1475 = vmatpush3.bf16.msra.mxu1 (!%p362_p2), %v1733_v0  ;;  %v419_v10 = vsub.s32 (!%p362_p2), 0, %v418_v8  ;;  %v428_v11 = vsub.s32 (!%p362_p2), 1, %v418_v8  ;;  %v438_v15 = vsub.s32 (!%p362_p2), 2, %v418_v8  ;;  %vm1102_vm7 = vcmask (!%p362_p2), 1045504  }
   0xa   : > { %1476 = vmatprep.subr.bf16.mxu1 (!%p362_p2), %v1649_v1  ;;  %1478 = vmatprep.mubr.msk.bf16.mxu1 (!%p362_p2), %vm1650_vm0, %v1649_v1  ;;  %vm1104_vm8 = vcmask (!%p362_p2), 1046528   ;;  %vm1235_vm9 = vcmask (!%p362_p2), 130048   ;;  %vm1294_vm10 = vcmask (!%p362_p2), 64512   ;;  %vm1342_vm11 = vcmask (!%p362_p2), 23552  }
   0xb   : > { %1469 = vmatpush3.bf16.msra.mxu0 (!%p362_p2), %v1741_v2  ;;  %v420_v13 = vrot.slane (!%p362_p2), %v411_v12, %v419_v10  ;;  %v429_v14 = vrot.slane (!%p362_p2), %v411_v12, %v428_v11  ;;  %v439_v19 = vrot.slane (!%p362_p2), %v411_v12, %v438_v15 }
   0xc   : > { %1482 = vmatprep.subr.bf16.mxu0 (!%p362_p2), %v1649_v1 }
   0xd   : > { %s1929_s22 = smov (!%p401_p3, %s1397_s22), 1  ;;  %1477 = vmatpush3.bf16.msra.mxu1 %v1741_v2 }
   0xe   : > { %s1402_s27 = sshll.u32 %s1929_s22, 3  ;;  %1471 = vmatmul.mubr.bf16.vlgmr.msra.gmra.mrb[0].mxu0 %v1651_v3  ;;  %1490 = vmatprep.subr.bf16.mxu1 %v1649_v1 }
   0xf   : > { %s404_s30 = scalar_lea.vmem %s1915_s0, %s1402_s27  ;;  %1483 = vmatpush3.bf16.msra.mxu0 %v1733_v0  ;;  %1486 = vmatprep.mubr.msk.bf16.mxu0 %vm1650_vm0, %v1649_v1  ;;  %s408_s28 = scalar_lea.vmem %s1927_s12, %s1402_s27 }
  0x10   : > { %v1760_v5 = vld [vmem:[%s404_s30] sm:$0xff]  ;;  %1484 = vmatprep.subr.bf16.mxu0 %v1649_v1 }
  0x11   : > { %414 = vperm.xlu0 %1566, %v1760_v5   ;;  %433 = vperm.xlu1 %1568, %v1760_v5  }
  0x13   : > { %1485 = vmatpush3.bf16.msra.mxu0 %v1741_v2 }
  0x14   : > { %1498 = vmatprep.subr.bf16.mxu0 %v1649_v1 }
  0x15   : > { %1567 = vset.pattern.permute.xlu0 %v1653_v6 }
  0x16   : > { %423 = vperm.xlu0 %1567, %v1760_v5  }
  0x1a   : > { %1569 = vset.pattern.permute.xlu0 %v1652_v4 }
  0x90   : > { %v415_v9 = vpop.permute.xlu0 %414  ;;  %v434_v20 = vpop.permute.xlu1 %433 }
  0x91   : > { %v421_v17 = vmul.f32 %v420_v13, %v415_v9  ;;  %v440_v22 = vmul.f32 %v439_v19, %v434_v20 }
  0x95   : > { %v424_v16 = vpop.permute.xlu0 %423 }
  0x96   : > { %v430_v18 = vmul.f32 %v429_v14, %v424_v16 }
  0x98   : > { %v431_v21 = vadd.f32 %v430_v18, %v421_v17 }
  0x9a   : > { %v441_v23 = vadd.f32 %v440_v22, %v431_v21 }
  0x9c   : > { %v1779_v25 = vadd.f32 %v1404_v24, %v441_v23 }
  0xe1   : > { %v504_v26 = vpop.f32.mrb[0].mxu0 }
  0xe2   : > { %v510_v27 = vadd.f32 %v504_v26, %v1779_v25  ;;  %v1472_v28 = vpop.f32.mrb[1].mxu0 }
  0xe3   : > { %v507_v29 = vpop.f32.mrb[2].mxu0 }
  0xe4   : > { %1575 = vtanh.f32 %v510_v27  ;;  %v1473_v30 = vpop.f32.mrb[3].mxu0  ;;  %v1407_v32 = vmul.f32 -1.442695, %v510_v27 }
  0xe6   : > { %1577 = vpow2.f32 %v1407_v32 }
  0xee   : > { %v1576_v31 = vpop.eup %1575 }
  0xef   : > { %520 = vrot.lane.b32.xlu1 %v1576_v31, %s1654_s17 }
  0xf0   : > { %v1578_v33 = vpop.eup %1577 }
  0xf1   : > { %v514_v34 = vadd.f32 1.0, %v1578_v33 }
  0xf3   : > { %1579 = vrcp.f32 %v514_v34 }
  0xfd   : > { %v1580_v35 = vpop.eup %1579 }
  0xfe   : > { %v518_v38 = vmul.f32 0.0, %v1580_v35 }
 0x161   : > { %v521_v36 = vpop.permute.xlu1 %520 }
 0x162   : > { %v523_v37 = vmul.f32 %v1580_v35, %v521_v36 }
 0x164   : > { %525 = vrot.lane.b32.xlu1 %v523_v37, %s1655_s18 }
 0x1d6   : > { %v526_v39 = vpop.permute.xlu1 %525 }
 0x1d7   : > { %v528_v40 = vadd.f32 %v526_v39, %v518_v38 }
 0x1d9   : > { %1581 = vtanh.f32 %v528_v40  ;;  %v594_v59 = vrot.slane %v528_v40, 7 }
 0x1e3   : > { %v1582_v41 = vpop.eup %1581 }
 0x1e4   : > { %531 = vrot.lane.b32.xlu0 %v1582_v41, %s1654_s17 }
 0x256   : > { %v532_v42 = vpop.permute.xlu0 %531 }
 0x257   : > { %v1785_v43 = vmul.f32 %v1580_v35, %v532_v42 }
 0x259   : > { %v535_v44 = vpack.c.bf16 %v1785_v43, %v1785_v43 }
 0x25b   : > { %537 = vrot.lane.b32.xlu1 %v535_v44, %s1655_s18 }
 0x2cd   : > { %v538_v45 = vpop.permute.xlu1 %537 }
 0x2ce   : > { %1479 = vmatmul.mubr.msk.bf16.vlgmr.msra.gmra.mrb[0].mxu1 %vm466_vm1, %v538_v45 }
 0x2cf   : > { %1491 = vmatpush3.bf16.msra.mxu1 %v1733_v0  ;;  %1494 = vmatprep.mubr.msk.bf16.mxu1 %vm1650_vm0, %v1649_v1 }
 0x2d0   : > { %1492 = vmatprep.subr.bf16.mxu1 %v1649_v1 }
 0x2d3   : > { %1493 = vmatpush3.bf16.msra.mxu1 %v1741_v2 }
 0x2d4   : > { %1506 = vmatprep.subr.bf16.mxu1 %v1649_v1 }
 0x3a1   : > { %v576_v46 = vpop.f32.mrb[0].mxu1 }
 0x3a2   : > { %v583_v47 = vrot.slane %v576_v46, 7  ;;  %v1480_v48 = vpop.f32.mrb[1].mxu1 }
 0x3a3   : > { %v579_v49 = vpop.f32.mrb[2].mxu1 }
 0x3a4   : > { %v585_v50 = vadd.f32 %v583_v47, %v1779_v25  ;;  %v1481_v51 = vpop.f32.mrb[3].mxu1 }
 0x3a6   : > { %1583 = vtanh.f32 %v585_v50  ;;  %v1409_v53 = vmul.f32 -1.442695, %v585_v50 }
 0x3a8   : > { %1585 = vpow2.f32 %v1409_v53 }
 0x3b0   : > { %v1584_v52 = vpop.eup %1583 }
 0x3b1   : > { %598 = vrot.lane.b32.xlu0 %v1584_v52, %s1654_s17 }
 0x3b2   : > { %v1586_v54 = vpop.eup %1585 }
 0x3b3   : > { %v589_v55 = vadd.f32 1.0, %v1586_v54 }
 0x3b5   : > { %1587 = vrcp.f32 %v589_v55 }
 0x3bf   : > { %v1588_v56 = vpop.eup %1587 }
 0x3c0   : > { %v596_v60 = vmul.f32 %v1588_v56, %v594_v59 }
 0x423   : > { %v599_v57 = vpop.permute.xlu0 %598 }
 0x424   : > { %v601_v58 = vmul.f32 %v1588_v56, %v599_v57 }
 0x426   : > { %603 = vrot.lane.b32.xlu1 %v601_v58, %s1655_s18 }
 0x498   : > { %v604_v61 = vpop.permute.xlu1 %603 }
 0x499   : > { %v606_v62 = vadd.f32 %v604_v61, %v596_v60 }
 0x49b   : > { %1589 = vtanh.f32 %v606_v62  ;;  %v674_v22 = vrot.slane %v606_v62, 7 }
 0x4a5   : > { %v1590_v63 = vpop.eup %1589 }
 0x4a6   : > { %609 = vrot.lane.b32.xlu0 %v1590_v63, %s1654_s17 }
 0x518   : > { %v610_v3 = vpop.permute.xlu0 %609 }
 0x519   : > { %v612_v4 = vmul.f32 %v1588_v56, %v610_v3 }
 0x51b   : > { %v613_v6 = vpack.c.bf16 %v612_v4, %v612_v4  ;;  %v1093_v30 = vsel %vm1092_vm2, %v1785_v43, %v612_v4 }
 0x51d   : > { %v615_v7 = vshrl.u32 %v613_v6, 16 }
 0x51f   : > { %617 = vrot.lane.b32.xlu1 %v615_v7, %s1655_s18 }
 0x591   : > { %v618_v8 = vpop.permute.xlu1 %617 }
 0x592   : > { %1487 = vmatmul.mubr.msk.bf16.vlgmr.msra.gmra.mrb[4].mxu0 %vm466_vm1, %v618_v8 }
 0x593   : > { %1499 = vmatpush3.bf16.msra.mxu0 %v1733_v0  ;;  %1502 = vmatprep.mubr.msk.bf16.mxu0 %vm1650_vm0, %v1649_v1 }
 0x594   : > { %1500 = vmatprep.subr.bf16.mxu0 %v1649_v1 }
 0x597   : > { %1501 = vmatpush3.bf16.msra.mxu0 %v1741_v2 }
 0x598   : > { %1514 = vmatprep.subr.bf16.mxu0 %v1649_v1 }
 0x665   : > { %v656_v9 = vpop.f32.mrb[4].mxu0 }
 0x666   : > { %v663_v10 = vrot.slane %v656_v9, 6  ;;  %v1488_v11 = vpop.f32.mrb[5].mxu0 }
 0x667   : > { %v659_v12 = vpop.f32.mrb[6].mxu0 }
 0x668   : > { %v665_v13 = vadd.f32 %v663_v10, %v1779_v25  ;;  %v1489_v14 = vpop.f32.mrb[7].mxu0 }
 0x66a   : > { %1591 = vtanh.f32 %v665_v13  ;;  %v1411_v16 = vmul.f32 -1.442695, %v665_v13 }
 0x66c   : > { %1593 = vpow2.f32 %v1411_v16 }
 0x674   : > { %v1592_v15 = vpop.eup %1591 }
 0x675   : > { %678 = vrot.lane.b32.xlu0 %v1592_v15, %s1654_s17 }
 0x676   : > { %v1594_v17 = vpop.eup %1593 }
 0x677   : > { %v669_v18 = vadd.f32 1.0, %v1594_v17 }
 0x679   : > { %1595 = vrcp.f32 %v669_v18 }
 0x683   : > { %v1596_v19 = vpop.eup %1595 }
 0x684   : > { %v676_v23 = vmul.f32 %v1596_v19, %v674_v22 }
 0x6e7   : > { %v679_v20 = vpop.permute.xlu0 %678 }
 0x6e8   : > { %v681_v21 = vmul.f32 %v1596_v19, %v679_v20 }
 0x6ea   : > { %683 = vrot.lane.b32.xlu1 %v681_v21, %s1655_s18 }
 0x75c   : > { %v684_v24 = vpop.permute.xlu1 %683 }
 0x75d   : > { %v686_v26 = vadd.f32 %v684_v24, %v676_v23 }
 0x75f   : > { %1597 = vtanh.f32 %v686_v26  ;;  %v753_v48 = vrot.slane %v686_v26, 7 }
 0x769   : > { %v1598_v27 = vpop.eup %1597 }
 0x76a   : > { %689 = vrot.lane.b32.xlu0 %v1598_v27, %s1654_s17 }
 0x7dc   : > { %v690_v28 = vpop.permute.xlu0 %689 }
 0x7dd   : > { %v692_v29 = vmul.f32 %v1596_v19, %v690_v28 }
 0x7df   : > { %v693_v31 = vpack.c.bf16 %v692_v29, %v692_v29  ;;  %v1095_v32 = vsel %vm1094_vm3, %v1093_v30, %v692_v29 }
 0x7e1   : > { %v695_v33 = vrot.slane %v693_v31, 1 }
 0x7e3   : > { %696 = vrot.lane.b32.xlu1 %v695_v33, %s1655_s18 }
 0x855   : > { %v697_v34 = vpop.permute.xlu1 %696 }
 0x856   : > { %1495 = vmatmul.mubr.msk.bf16.vlgmr.msra.gmra.mrb[4].mxu1 %vm466_vm1, %v697_v34 }
 0x857   : > { %1507 = vmatpush3.bf16.msra.mxu1 %v1733_v0  ;;  %1510 = vmatprep.mubr.msk.bf16.mxu1 %vm1650_vm0, %v1649_v1 }
 0x858   : > { %1508 = vmatprep.subr.bf16.mxu1 %v1649_v1 }
 0x85b   : > { %1509 = vmatpush3.bf16.msra.mxu1 %v1741_v2 }
 0x85c   : > { %1522 = vmatprep.subr.bf16.mxu1 %v1649_v1 }
 0x929   : > { %v735_v35 = vpop.f32.mrb[4].mxu1 }
 0x92a   : > { %v742_v36 = vrot.slane %v735_v35, 5  ;;  %v1496_v37 = vpop.f32.mrb[5].mxu1 }
 0x92b   : > { %v738_v38 = vpop.f32.mrb[6].mxu1 }
 0x92c   : > { %v744_v39 = vadd.f32 %v742_v36, %v1779_v25  ;;  %v1497_v40 = vpop.f32.mrb[7].mxu1 }
 0x92e   : > { %1599 = vtanh.f32 %v744_v39  ;;  %v1413_v42 = vmul.f32 -1.442695, %v744_v39 }
 0x930   : > { %1601 = vpow2.f32 %v1413_v42 }
 0x938   : > { %v1600_v41 = vpop.eup %1599 }
 0x939   : > { %757 = vrot.lane.b32.xlu0 %v1600_v41, %s1654_s17 }
 0x93a   : > { %v1602_v43 = vpop.eup %1601 }
 0x93b   : > { %v748_v44 = vadd.f32 1.0, %v1602_v43 }
 0x93d   : > { %1603 = vrcp.f32 %v748_v44 }
 0x947   : > { %v1604_v45 = vpop.eup %1603 }
 0x948   : > { %v755_v49 = vmul.f32 %v1604_v45, %v753_v48 }
 0x9ab   : > { %v758_v46 = vpop.permute.xlu0 %757 }
 0x9ac   : > { %v760_v47 = vmul.f32 %v1604_v45, %v758_v46 }
 0x9ae   : > { %762 = vrot.lane.b32.xlu1 %v760_v47, %s1655_s18 }
 0xa20   : > { %v763_v50 = vpop.permute.xlu1 %762 }
 0xa21   : > { %v765_v51 = vadd.f32 %v763_v50, %v755_v49 }
 0xa23   : > { %1605 = vtanh.f32 %v765_v51  ;;  %v834_v13 = vrot.slane %v765_v51, 7 }
 0xa2d   : > { %v1606_v52 = vpop.eup %1605 }
 0xa2e   : > { %768 = vrot.lane.b32.xlu0 %v1606_v52, %s1654_s17 }
 0xaa0   : > { %v769_v53 = vpop.permute.xlu0 %768 }
 0xaa1   : > { %v771_v54 = vmul.f32 %v1604_v45, %v769_v53 }
 0xaa3   : > { %v772_v55 = vpack.c.bf16 %v771_v54, %v771_v54  ;;  %v1097_v56 = vsel %vm1096_vm4, %v1095_v32, %v771_v54 }
 0xaa5   : > { %v774_v57 = vshrl.u32 %v772_v55, 16 }
 0xaa7   : > { %v776_v58 = vrot.slane %v774_v57, 1 }
 0xaa9   : > { %777 = vrot.lane.b32.xlu1 %v776_v58, %s1655_s18 }
 0xb1b   : > { %v778_v59 = vpop.permute.xlu1 %777 }
 0xb1c   : > { %1503 = vmatmul.mubr.msk.bf16.vlgmr.msra.gmra.mrb[8].mxu0 %vm466_vm1, %v778_v59 }
 0xb1d   : > { %1515 = vmatpush3.bf16.msra.mxu0 %v1733_v0  ;;  %1518 = vmatprep.mubr.msk.bf16.mxu0 %vm1650_vm0, %v1649_v1 }
 0xb1e   : > { %1516 = vmatprep.subr.bf16.mxu0 %v1649_v1 }
 0xb21   : > { %1517 = vmatpush3.bf16.msra.mxu0 %v1741_v2 }
 0xb22   : > { %1530 = vmatprep.subr.bf16.mxu0 %v1649_v1 }
 0xbef   : > { %v816_v60 = vpop.f32.mrb[8].mxu0 }
 0xbf0   : > { %v823_v61 = vrot.slane %v816_v60, 4  ;;  %v1504_v62 = vpop.f32.mrb[9].mxu0 }
 0xbf1   : > { %v819_v63 = vpop.f32.mrb[10].mxu0 }
 0xbf2   : > { %v825_v3 = vadd.f32 %v823_v61, %v1779_v25  ;;  %v1505_v4 = vpop.f32.mrb[11].mxu0 }
 0xbf4   : > { %1607 = vtanh.f32 %v825_v3  ;;  %v1415_v7 = vmul.f32 -1.442695, %v825_v3 }
 0xbf6   : > { %1609 = vpow2.f32 %v1415_v7 }
 0xbfe   : > { %v1608_v6 = vpop.eup %1607 }
 0xbff   : > { %838 = vrot.lane.b32.xlu0 %v1608_v6, %s1654_s17 }
 0xc00   : > { %v1610_v8 = vpop.eup %1609 }
 0xc01   : > { %v829_v9 = vadd.f32 1.0, %v1610_v8 }
 0xc03   : > { %1611 = vrcp.f32 %v829_v9 }
 0xc0d   : > { %v1612_v10 = vpop.eup %1611 }
 0xc0e   : > { %v836_v14 = vmul.f32 %v1612_v10, %v834_v13 }
 0xc71   : > { %v839_v11 = vpop.permute.xlu0 %838 }
 0xc72   : > { %v841_v12 = vmul.f32 %v1612_v10, %v839_v11 }
 0xc74   : > { %843 = vrot.lane.b32.xlu1 %v841_v12, %s1655_s18 }
 0xce6   : > { %v844_v15 = vpop.permute.xlu1 %843 }
 0xce7   : > { %v846_v16 = vadd.f32 %v844_v15, %v836_v14 }
 0xce9   : > { %1613 = vtanh.f32 %v846_v16  ;;  %v913_v36 = vrot.slane %v846_v16, 7 }
 0xcf3   : > { %v1614_v17 = vpop.eup %1613 }
 0xcf4   : > { %849 = vrot.lane.b32.xlu0 %v1614_v17, %s1654_s17 }
 0xd66   : > { %v850_v18 = vpop.permute.xlu0 %849 }
 0xd67   : > { %v852_v19 = vmul.f32 %v1612_v10, %v850_v18 }
 0xd69   : > { %v853_v20 = vpack.c.bf16 %v852_v19, %v852_v19  ;;  %v1099_v21 = vsel %vm1098_vm5, %v1097_v56, %v852_v19 }
 0xd6b   : > { %v855_v22 = vrot.slane %v853_v20, 2 }
 0xd6d   : > { %856 = vrot.lane.b32.xlu1 %v855_v22, %s1655_s18 }
 0xddf   : > { %v857_v23 = vpop.permute.xlu1 %856 }
 0xde0   : > { %1511 = vmatmul.mubr.msk.bf16.vlgmr.msra.gmra.mrb[8].mxu1 %vm466_vm1, %v857_v23 }
 0xde1   : > { %1523 = vmatpush3.bf16.msra.mxu1 %v1733_v0  ;;  %1526 = vmatprep.mubr.msk.bf16.mxu1 %vm1650_vm0, %v1649_v1 }
 0xde2   : > { %1524 = vmatprep.subr.bf16.mxu1 %v1649_v1 }
 0xde5   : > { %1525 = vmatpush3.bf16.msra.mxu1 %v1741_v2 }
 0xde6   : > { %1538 = vmatprep.subr.bf16.mxu1 %v1649_v1 }
 0xeb3   : > { %v895_v24 = vpop.f32.mrb[8].mxu1 }
 0xeb4   : > { %v902_v26 = vrot.slane %v895_v24, 3  ;;  %v1512_v27 = vpop.f32.mrb[9].mxu1 }
 0xeb5   : > { %v898_v28 = vpop.f32.mrb[10].mxu1 }
 0xeb6   : > { %v904_v29 = vadd.f32 %v902_v26, %v1779_v25  ;;  %v1513_v30 = vpop.f32.mrb[11].mxu1 }
 0xeb8   : > { %1615 = vtanh.f32 %v904_v29  ;;  %v1417_v0 = vmul.f32 -1.442695, %v904_v29 }
 0xeba   : > { %1617 = vpow2.f32 %v1417_v0 }
 0xec2   : > { %v1616_v31 = vpop.eup %1615 }
 0xec3   : > { %917 = vrot.lane.b32.xlu0 %v1616_v31, %s1654_s17 }
 0xec4   : > { %v1618_v32 = vpop.eup %1617 }
 0xec5   : > { %v908_v33 = vadd.f32 1.0, %v1618_v32 }
 0xec7   : > { %1619 = vrcp.f32 %v908_v33 }
 0xed1   : > { %v1620_v34 = vpop.eup %1619 }
 0xed2   : > { %v915_v37 = vmul.f32 %v1620_v34, %v913_v36 }
 0xf35   : > { %v918_v2 = vpop.permute.xlu0 %917 }
 0xf36   : > { %v920_v35 = vmul.f32 %v1620_v34, %v918_v2 }
 0xf38   : > { %922 = vrot.lane.b32.xlu1 %v920_v35, %s1655_s18 }
 0xfaa   : > { %v923_v38 = vpop.permute.xlu1 %922 }
 0xfab   : > { %v925_v39 = vadd.f32 %v923_v38, %v915_v37 }
 0xfad   : > { %1621 = vtanh.f32 %v925_v39  ;;  %v994_v61 = vrot.slane %v925_v39, 7 }
 0xfb7   : > { %v1622_v40 = vpop.eup %1621 }
 0xfb8   : > { %928 = vrot.lane.b32.xlu0 %v1622_v40, %s1654_s17  ;;  %v1423_v40 = vld [vmem:[%s1920_s5] ss:$0 sm:$0xff] }
0x102a   : > { %v929_v41 = vpop.permute.xlu0 %928 }
0x102b   : > { %v931_v42 = vmul.f32 %v1620_v34, %v929_v41  ;;  %v1422_v34 = vld [vmem:[%s1919_s4] ss:$0 sm:$0xff] }
0x102c   : > { %v1572_v41 = vld [vmem:[%s1921_s6] sm:$0xff]  }
0x102d   : > { %v932_v43 = vpack.c.bf16 %v931_v42, %v931_v42  ;;  %v1101_v44 = vsel %vm1100_vm6, %v1099_v21, %v931_v42  ;;  %v1573_v42 = vld [vmem:[%s1921_s6 + $0x8] sm:$0xff]  }
0x102f   : > { %v934_v45 = vshrl.u32 %v932_v43, 16 }
0x1031   : > { %v936_v46 = vrot.slane %v934_v45, 2 }
0x1033   : > { %937 = vrot.lane.b32.xlu1 %v936_v46, %s1655_s18  ;;  %v1574_v46 = vld [vmem:[%s1923_s8] sm:$0xff]  }
0x10a5   : > { %v938_v47 = vpop.permute.xlu1 %937 }
0x10a6   : > { %1519 = vmatmul.mubr.msk.bf16.vlgmr.msra.gmra.mrb[12].mxu0 %vm466_vm1, %v938_v47 }
0x10a7   : > { %1534 = vmatprep.mubr.msk.bf16.mxu0 %vm1650_vm0, %v1649_v1  ;;  %1531 = vmatpush3.bf16.msra.mxu0 %v1572_v41 }
0x10a8   : > { %1532 = vmatprep.subr.bf16.mxu0 %v1649_v1 }
0x10ab   : > { %1533 = vmatpush3.bf16.msra.mxu0 %v1573_v42 }
0x10ac   : > { %1544 = vmatprep.subr.bf16.mxu0 %v1649_v1 }
0x1179   : > { %v976_v48 = vpop.f32.mrb[12].mxu0 }
0x117a   : > { %v983_v49 = vrot.slane %v976_v48, 2  ;;  %v1520_v50 = vpop.f32.mrb[13].mxu0 }
0x117b   : > { %v979_v51 = vpop.f32.mrb[14].mxu0 }
0x117c   : > { %v985_v52 = vadd.f32 %v983_v49, %v1779_v25  ;;  %v1521_v53 = vpop.f32.mrb[15].mxu0 }
0x117e   : > { %1623 = vtanh.f32 %v985_v52  ;;  %v1419_v55 = vmul.f32 -1.442695, %v985_v52 }
0x1180   : > { %1625 = vpow2.f32 %v1419_v55  ;;  %v1424_v55 = vld [vmem:[%s1922_s7] ss:$0 sm:$0xff] }
0x1188   : > { %v1624_v54 = vpop.eup %1623 }
0x1189   : > { %998 = vrot.lane.b32.xlu0 %v1624_v54, %s1654_s17 }
0x118a   : > { %v1626_v56 = vpop.eup %1625 }
0x118b   : > { %v989_v57 = vadd.f32 1.0, %v1626_v56 }
0x118d   : > { %1627 = vrcp.f32 %v989_v57 }
0x1197   : > { %v1628_v58 = vpop.eup %1627 }
0x1198   : > { %v996_v62 = vmul.f32 %v1628_v58, %v994_v61 }
0x11fb   : > { %v999_v59 = vpop.permute.xlu0 %998 }
0x11fc   : > { %v1001_v60 = vmul.f32 %v1628_v58, %v999_v59 }
0x11fe   : > { %1003 = vrot.lane.b32.xlu1 %v1001_v60, %s1655_s18 }
0x1270   : > { %v1004_v63 = vpop.permute.xlu1 %1003 }
0x1271   : > { %v1006_v3 = vadd.f32 %v1004_v63, %v996_v62  ;;  %v1286_v63 = vld [vmem:[%s1925_s10] sm:$0xf] }
0x1273   : > { %1629 = vtanh.f32 %v1006_v3  ;;  %v1073_v26 = vrot.slane %v1006_v3, 7  ;;  %v1299_v3 = vsel %vm1098_vm5, %v1286_v63, 0 }
0x127d   : > { %v1630_v4 = vpop.eup %1629 }
0x127e   : > { %1009 = vrot.lane.b32.xlu0 %v1630_v4, %s1654_s17 }
0x12f0   : > { %v1010_v6 = vpop.permute.xlu0 %1009 }
0x12f1   : > { %v1012_v7 = vmul.f32 %v1628_v58, %v1010_v6 }
0x12f3   : > { %v1013_v8 = vpack.c.bf16 %v1012_v7, %v1012_v7  ;;  %v1103_v9 = vsel %vm1102_vm7, %v1101_v44, %v1012_v7 }
0x12f5   : > { %v1015_v10 = vrot.slane %v1013_v8, 3 }
0x12f7   : > { %1016 = vrot.lane.b32.xlu1 %v1015_v10, %s1655_s18 }
0x1369   : > { %v1017_v11 = vpop.permute.xlu1 %1016 }
0x136a   : > { %1527 = vmatmul.mubr.msk.bf16.vlgmr.msra.gmra.mrb[12].mxu1 %vm466_vm1, %v1017_v11 }
0x136b   : > { %1540 = vmatprep.mubr.msk.bf16.mxu1 %vm1650_vm0, %v1649_v1  ;;  %1539 = vmatpush3.bf16.msra.mxu1 %v1574_v46 }
0x143d   : > { %v1055_v12 = vpop.f32.mrb[12].mxu1 }
0x143e   : > { %v1062_v13 = vrot.slane %v1055_v12, 1  ;;  %v1528_v14 = vpop.f32.mrb[13].mxu1 }
0x143f   : > { %v1058_v15 = vpop.f32.mrb[14].mxu1  ;;  %v1431_v14 = vld [vmem:[%s1926_s11] ss:$0 sm:$0xff] }
0x1440   : > { %v1064_v16 = vadd.f32 %v1062_v13, %v1779_v25  ;;  %v1529_v17 = vpop.f32.mrb[15].mxu1 }
0x1442   : > { %1631 = vtanh.f32 %v1064_v16  ;;  %v1421_v19 = vmul.f32 -1.442695, %v1064_v16 }
0x1444   : > { %1633 = vpow2.f32 %v1421_v19 }
0x144c   : > { %v1632_v18 = vpop.eup %1631 }
0x144d   : > { %1077 = vrot.lane.b32.xlu0 %v1632_v18, %s1654_s17 }
0x144e   : > { %v1634_v20 = vpop.eup %1633 }
0x144f   : > { %v1068_v21 = vadd.f32 1.0, %v1634_v20 }
0x1451   : > { %1635 = vrcp.f32 %v1068_v21 }
0x145b   : > { %v1636_v22 = vpop.eup %1635 }
0x145c   : > { %v1075_v27 = vmul.f32 %v1636_v22, %v1073_v26 }
0x14bf   : > { %v1078_v23 = vpop.permute.xlu0 %1077 }
0x14c0   : > { %v1080_v24 = vmul.f32 %v1636_v22, %v1078_v23 }
0x14c2   : > { %1082 = vrot.lane.b32.xlu1 %v1080_v24, %s1655_s18 }
0x1534   : > { %v1083_v28 = vpop.permute.xlu1 %1082 }
0x1535   : > { %v1085_v29 = vadd.f32 %v1083_v28, %v1075_v27 }
0x1537   : > { %1637 = vtanh.f32 %v1085_v29 }
0x1541   : > { %v1638_v25 = vpop.eup %1637 }
0x1542   : > { %1088 = vrot.lane.b32.xlu0 %v1638_v25, %s1654_s17 }
0x15b4   : > { %v1089_v30 = vpop.permute.xlu0 %1088 }
0x15b5   : > { %v1091_v31 = vmul.f32 %v1636_v22, %v1089_v30 }
0x15b7   : > { %v1105_v0 = vsel %vm1104_vm8, %v1103_v9, %v1091_v31 }
0x15b8   : > { %1107 = vrot.lane.b32.xlu1 %v1105_v0, %s1655_s18 }
0x162a   : > { %v1108_v32 = vpop.permute.xlu1 %1107 }
0x162b   : > { %v1110_v33 = vsel %vm466_vm1, %v1108_v32, 0.0 }
0x162c   : > { %1111 = vadd.xlane.f32.xlu0 %v1110_v33 }
0x1642   : > { %1134 = vrot.lane.b32.xlu0 %v1422_v34, %s1656_s23 }
0x16b9   : > { %v1112_v2 = vpop.xlane.xlu0 %1111 }
0x16ba   : > { %v1114_v35 = vmul.f32 0.03125, %v1112_v2 }
0x16bc   : > { %v1115_v36 = vsub.f32 %v1105_v0, %v1114_v35 }
0x16bd   : > { %v1135_v48 = vpop.permute.xlu0 %1134 }
0x16be   : > { %v1116_v37 = vmul.f32 %v1115_v36, %v1115_v36 }
0x16c0   : > { %1118 = vrot.lane.b32.xlu1 %v1116_v37, %s1655_s18 }
0x1732   : > { %v1119_v38 = vpop.permute.xlu1 %1118 }
0x1733   : > { %v1121_v39 = vsel %vm466_vm1, %v1119_v38, 0.0 }
0x1734   : > { %1122 = vadd.xlane.f32.xlu1 %v1121_v39 }
0x1745   : > { %1144 = vrot.lane.b32.xlu1 %v1423_v40, %s1656_s23 }
0x17c1   : > { %v1123_v43 = vpop.xlane.xlu1 %1122 }
0x17c2   : > { %v1124_v44 = vmul.f32 0.03125, %v1123_v43 }
0x17c4   : > { %v1125_v45 = vadd.f32 1e-05, %v1124_v44 }
0x17c5   : > { %v1145_v50 = vpop.permute.xlu1 %1144 }
0x17c6   : > { %1639 = vrsqrt.f32 %v1125_v45 }
0x17d0   : > { %v1640_v47 = vpop.eup %1639 }
0x17d1   : > { %v1127_v49 = vmul.f32 %v1640_v47, %v1115_v36 }
0x17d3   : > { %v1137_v51 = vmul.f32 %v1135_v48, %v1127_v49 }
0x17d5   : > { %v1147_v52 = vadd.f32 %v1145_v50, %v1137_v51 }
0x17d7   : > { %v1148_v53 = vpack.c.bf16 %v1147_v52, %v1147_v52 }
0x17d9   : > { %1161 = vrot.lane.b32.xlu0 %v1148_v53, %s1655_s18 }
0x17dd   : > { %1281 = vrot.lane.b32.xlu0 %v1147_v52, %s1655_s18 }
0x184b   : > { %v1162_v54 = vpop.permute.xlu0 %1161 }
0x184c   : > { %1535 = vmatmul.mubr.msk.bf16.vlgmr.msra.gmra.mrb[16].mxu0 %vm466_vm1, %v1162_v54 }
0x184d   : > { %1546 = vmatprep.mubr.msk.bf16.mxu0 %vm1650_vm0, %v1649_v1  ;;  %1545 = vmatpush3.bf16.msra.mxu0 %v1299_v3  ;;  %v1428_v1 = vld [vmem:[%s1924_s9] ss:$0 sm:$0xff] }
0x184f   : > { %v1282_v11 = vpop.permute.xlu0 %1281 }
0x191f   : > { %v1212_v56 = vpop.f32.mrb[16].mxu0 }
0x1920   : > { %v1213_v57 = vadd.f32 %v1424_v55, %v1212_v56  ;;  %v1536_v58 = vpop.f32.mrb[17].mxu0 }
0x1921   : > { %v1215_v59 = vpop.f32.mrb[18].mxu0 }
0x1922   : > { %v1218_v60 = vmax.f32 %v1213_v57, 0.0  ;;  %v1537_v61 = vpop.f32.mrb[19].mxu0 }
0x1924   : > { %v1219_v62 = vpack.c.bf16 %v1218_v60, %v1218_v60 }
0x1926   : > { %1541 = vmatmul.mubr.msk.bf16.vlgmr.msra.gmra.mrb[16].mxu1 %vm1235_vm9, %v1219_v62 }
0x19f9   : > { %v1273_v4 = vpop.f32.mrb[16].mxu1 }
0x19fa   : > { %v1274_v6 = vadd.f32 %v1428_v1, %v1273_v4  ;;  %v1542_v7 = vpop.f32.mrb[17].mxu1 }
0x19fb   : > { %v1276_v8 = vpop.f32.mrb[18].mxu1 }
0x19fc   : > { %v1279_v9 = vmax.f32 %v1274_v6, 0.0  ;;  %v1543_v10 = vpop.f32.mrb[19].mxu1 }
0x19fe   : > { %v1284_v12 = vadd.f32 %v1282_v11, %v1279_v9 }
0x1a00   : > { %v1285_v13 = vpack.c.bf16 %v1284_v12, %v1284_v12 }
0x1a02   : > { %1547 = vmatmul.mubr.msk.bf16.vlgmr.msra.gmra.mrb[20].mxu0 %vm1294_vm10, %v1285_v13 }
0x1ad5   : > { %v1335_v15 = vpop.f32.mrb[20].mxu0 }
0x1ad6   : > { %v1336_v16 = vadd.f32 %v1431_v14, %v1335_v15  ;;  %v1548_v17 = vpop.f32.mrb[21].mxu0 }
0x1ad7   : > { %v1338_v18 = vpop.f32.mrb[22].mxu0 }
0x1ad8   : > { %v1341_v19 = vadd.f32 %v1336_v16, %v1760_v5  ;;  %v1549_v20 = vpop.f32.mrb[23].mxu0 }
0x1ada   : > { %1343 = vst.msk [vmem:[%s408_s28] sm:$0xff] %vm1342_vm11, %v1341_v19 }
0x1adb PF: > { %s22_s21 = sadd.s32 1, %s1647_s21  }
0x1adc   : > { %p19_p4 = scmp.ge.s32.totalorder %s22_s21, 4  }
0x1ade   :  { %21 = sbr.rel (!%p19_p4) target bundleno = 1 (0x1), region = 98 }

</bundles_post_ra>
